<compile_context>
chip_gen: v6e
topology: v6e:2x2x1
jax: 0.10.0
libtpu: 0.0.40
codegen_flags: <defaults>
</compile_context>

<pallas_src>
import jax
import jax.numpy as jnp
from jax.experimental import pallas as pl
from jax.experimental.pallas import tpu as pltpu


def cbam_kernel(x_ref, w1t_ref, w2t_ref, saw_ref, sab_ref, wpt_ref, bp_ref, o_ref):
    # x_ref: (Bt, L, C) bf16; w1t: (C, C//r) f32; w2t: (C//r, C) f32; wpt: (C, out_dim) f32;
    # bp: (1, out_dim) f32; saw: SMEM (2,) f32; sab: SMEM (1,) f32; o_ref: (Bt, L, out_dim).
    Bt, L, C = x_ref.shape
    out_dim = o_ref.shape[-1]

    x = x_ref[...].astype(jnp.float32)                         # (Bt, L, C) — single upcast

    # ---- Channel attention: AdaptiveMax/AvgPool2d(1) == reduction over L (batched) ----
    max_c = jnp.max(x, axis=1)                                  # (Bt, C)
    avg_c = jnp.mean(x, axis=1)                                 # (Bt, C)
    pooled = jnp.concatenate([max_c, avg_c], axis=0)            # (2*Bt, C)

    # Shared SE MLP: 1x1 conv C -> C//r (no bias), ReLU, 1x1 conv C//r -> C (no bias).
    h = jnp.maximum(
        jnp.dot(pooled, w1t_ref[...], preferred_element_type=jnp.float32), 0.0)
    se = jnp.dot(h, w2t_ref[...], preferred_element_type=jnp.float32)   # (2*Bt, C)

    # sigmoid(se(max_pool) + se(avg_pool)) — per-batch channel gate, broadcast over L.
    ca = jax.nn.sigmoid(se[:Bt] + se[Bt:])[:, None, :]          # (Bt, 1, C)
    ob = x * ca                                                 # (Bt, L, C)

    # ---- Spatial attention (kernel_size=1 conv over [max_c, mean_c]) — batched ----
    max_s = jnp.max(ob, axis=2, keepdims=True)                  # (Bt, L, 1)
    avg_s = jnp.mean(ob, axis=2, keepdims=True)                 # (Bt, L, 1)
    sa = jax.nn.sigmoid(saw_ref[0] * max_s + saw_ref[1] * avg_s + sab_ref[0])
    gated = ob * sa + x                                         # residual add

    # ---- Linear projection: one (Bt*L, C) @ (C, out_dim) matmul, one contiguous store ----
    proj = jnp.dot(gated.reshape(Bt * L, C), wpt_ref[...],
                   preferred_element_type=jnp.float32) + bp_ref[...]
    o_ref[...] = proj.reshape(Bt, L, out_dim).astype(o_ref.dtype)


def _pick_batch_tile(B, L, C, out_dim, in_itemsize, out_itemsize,
                     max_bt=8, budget_bytes=12 << 20):
    """Pick the batch tile counting BOTH the (double-buffered) pipeline blocks and the f32
    in-kernel temporaries (x, gated, proj) so the estimate is honest on v7x's 64 MiB VMEM
    and v5e's 16 MiB scoped default."""
    per_b = (
        2 * L * C * in_itemsize            # double-buffered bf16 input block
        + 2 * L * out_dim * out_itemsize   # double-buffered output block
        + (2 * L * C + L * out_dim) * 4    # f32 temporaries: x, gated, proj
    )
    bt = max(1, min(B, max_bt, budget_bytes // max(per_b, 1)))
    if B >= 2:
        bt = min(bt, max(1, B // 2))       # keep >= 2 grid programs (both v7x TensorCores busy)
    while B % bt:
        bt -= 1
    return bt


def cbam_block(x, w1, w2, sa_w, sa_b, w_proj, b_proj, *, compute_dtype=jnp.bfloat16):
    """x: (B, L, C). Weights follow PyTorch shapes:
       w1: (C//r, C)   -- Conv2d(C, C//r, 1, bias=False).weight squeezed
       w2: (C, C//r)   -- Conv2d(C//r, C, 1, bias=False).weight squeezed
       sa_w: (2,), sa_b: (1,) -- Conv2d(2, 1, 1) weight / bias squeezed
       w_proj: (out_dim, C), b_proj: (out_dim,) -- nn.Linear(C, out_dim)
    """
    B, L, C = x.shape
    out_dim = w_proj.shape[0]
    cdt = jnp.dtype(compute_dtype)
    out_dtype = jnp.asarray(x).dtype

    # x is the dominant HBM traffic -> bf16 DMA; weights are tiny -> keep f32 (no extra rounding).
    xc = jnp.asarray(x).astype(cdt)
    w1t = jnp.asarray(w1, jnp.float32).T                       # (C, C//r)
    w2t = jnp.asarray(w2, jnp.float32).T                       # (C//r, C)
    wpt = jnp.asarray(w_proj, jnp.float32).T                   # (C, out_dim)
    bp = jnp.asarray(b_proj, jnp.float32).reshape(1, out_dim)
    saw = jnp.asarray(sa_w, jnp.float32).reshape(2)
    sab = jnp.asarray(sa_b, jnp.float32).reshape(1)
    Cr = w1t.shape[1]

    bt = _pick_batch_tile(B, L, C, out_dim, cdt.itemsize, jnp.dtype(out_dtype).itemsize)
    n_steps = B // bt

    def weight_spec(shape):
        # Constant index_map -> never re-fetched; single-buffer to save VMEM.
        return pl.BlockSpec(shape, lambda i: (0, 0), pipeline_mode=pl.Buffered(1))

    # No next block to prefetch when the grid has a single step -> don't double-buffer x either.
    x_spec = pl.BlockSpec(
        (bt, L, C), lambda i: (i, 0, 0),
        pipeline_mode=pl.Buffered(1) if n_steps == 1 else pl.Buffered(2))

    res = pl.pallas_call(
        cbam_kernel,
        out_shape=jax.ShapeDtypeStruct((B, L, out_dim), out_dtype),
        grid_spec=pltpu.PrefetchScalarGridSpec(
            num_scalar_prefetch=0,
            grid=(n_steps,),
            in_specs=[
                x_spec,
                weight_spec((C, Cr)),
                weight_spec((Cr, C)),
                pl.BlockSpec(memory_space=pltpu.SMEM),
                pl.BlockSpec(memory_space=pltpu.SMEM),
                weight_spec((C, out_dim)),
                weight_spec((1, out_dim)),
            ],
            out_specs=pl.BlockSpec((bt, L, out_dim), lambda i: (i, 0, 0)),
        ),
        compiler_params=pltpu.CompilerParams(
            dimension_semantics=("parallel",),
            vmem_limit_bytes=32 << 20,
        ),
    )(xc, w1t, w2t, saw, sab, wpt, bp)

    return res


def cbam_reference(x, w1, w2, sa_w, sa_b, w_proj, b_proj):
    # Pure-JAX f32 reference mirroring the PyTorch forward.
    max_c = jnp.max(x, axis=1, keepdims=True)                # (B, 1, C)
    avg_c = jnp.mean(x, axis=1, keepdims=True)               # (B, 1, C)

    def se(v):                                               # v: (B, 1, C)
        h = jnp.maximum(jnp.einsum("blc,rc->blr", v, w1), 0.0)
        return jnp.einsum("blr,cr->blc", h, w2)

    ca = jax.nn.sigmoid(se(max_c) + se(avg_c))               # (B, 1, C)
    out = x * ca
    max_s = jnp.max(out, axis=2, keepdims=True)              # (B, L, 1)
    avg_s = jnp.mean(out, axis=2, keepdims=True)
    sa = jax.nn.sigmoid(sa_w[0] * max_s + sa_w[1] * avg_s + sa_b[0])
    out = out * sa + x
    return jnp.einsum("blc,oc->blo", out, w_proj) + b_proj


if __name__ == "__main__":
    # Module hyperparameters (small, consistent with the forward's assertions)
    B = 2
    input_size = 8
    L = input_size * input_size      # 64
    C = 32                           # input_dim
    reduction = 4
    Cr = C // reduction              # 8
    out_dim = 16

    key = jax.random.PRNGKey(0)
    kx, k1, k2, k3, k4, k5, k6 = jax.random.split(key, 7)

    x = jax.random.normal(kx, (B, L, C), dtype=jnp.float32)

    # Deterministic synthetic parameters (PyTorch-shaped)
    w1 = 0.1 * jax.random.normal(k1, (Cr, C), dtype=jnp.float32)        # Conv2d(C, C//r, 1, bias=False)
    w2 = 0.1 * jax.random.normal(k2, (C, Cr), dtype=jnp.float32)        # Conv2d(C//r, C, 1, bias=False)
    sa_w = 0.5 * jax.random.normal(k3, (2,), dtype=jnp.float32)         # Conv2d(2, 1, 1).weight
    sa_b = 0.1 * jax.random.normal(k4, (1,), dtype=jnp.float32)         # Conv2d(2, 1, 1).bias
    w_proj = 0.05 * jax.random.normal(k5, (out_dim, C), dtype=jnp.float32)  # Linear(C, out_dim)
    b_proj = 0.05 * jax.random.normal(k6, (out_dim,), dtype=jnp.float32)

    out = jax.block_until_ready(cbam_block(x, w1, w2, sa_w, sa_b, w_proj, b_proj))

    # Reference in f32; only x is quantized to bf16 (the only bf16 leaf the kernel DMAs).
    q = lambda a: a.astype(jnp.bfloat16).astype(jnp.float32)
    ref = cbam_reference(q(x), w1, w2, sa_w, sa_b, w_proj, b_proj)

    assert out.shape == (B, L, out_dim)
    assert jnp.allclose(out.astype(jnp.float32), ref, atol=2e-2, rtol=2e-2), "mismatch vs reference"

    print("KERNEL_OK")
</pallas_src>

<mosaic_0001>
module attributes {stable_mosaic.version = 11 : i64} {
  func.func @cbam_kernel(%arg0: i32, %arg1: memref<1x64x32xbf16, #tpu.memory_space<vmem>>, %arg2: memref<32x8xf32, #tpu.memory_space<vmem>>, %arg3: memref<8x32xf32, #tpu.memory_space<vmem>>, %arg4: memref<2xf32, #tpu.memory_space<smem>>, %arg5: memref<1xf32, #tpu.memory_space<smem>>, %arg6: memref<32x16xf32, #tpu.memory_space<vmem>>, %arg7: memref<1x16xf32, #tpu.memory_space<vmem>>, %arg8: memref<1x64x16xf32, #tpu.memory_space<vmem>>) attributes {dimension_semantics = [#tpu.dimension_semantics<parallel>], iteration_bounds = array<i64: 2>, scalar_prefetch = 0 : i64, scratch_operands = 0 : i64, tpu.core_type = #tpu.core_type<tc>, window_params = [{pipeline_mode = #tpu.pipeline_mode<double_buffered>, transform_indices = @transform_0, window_bounds = array<i64: 1, 64, 32>}, {pipeline_mode = #tpu.pipeline_mode<synchronous>, transform_indices = @transform_1, window_bounds = array<i64: 32, 8>}, {pipeline_mode = #tpu.pipeline_mode<synchronous>, transform_indices = @transform_2, window_bounds = array<i64: 8, 32>}, {transform_indices = @transform_3, window_bounds = array<i64: 2>}, {transform_indices = @transform_4, window_bounds = array<i64: 1>}, {pipeline_mode = #tpu.pipeline_mode<synchronous>, transform_indices = @transform_5, window_bounds = array<i64: 32, 16>}, {pipeline_mode = #tpu.pipeline_mode<synchronous>, transform_indices = @transform_6, window_bounds = array<i64: 1, 16>}, {transform_indices = @transform_7, window_bounds = array<i64: 1, 64, 16>}]} {
    %c0 = arith.constant 0 : index
    %c0_0 = arith.constant 0 : index
    %c0_1 = arith.constant 0 : index
    %0 = vector.load %arg1[%c0, %c0_0, %c0_1] : memref<1x64x32xbf16, #tpu.memory_space<vmem>>, vector<1x64x32xbf16>
    %1 = arith.extf %0 : vector<1x64x32xbf16> to vector<1x64x32xf32>
    %cst = arith.constant dense<0xFF800000> : vector<1x32xf32>
    %2 = vector.multi_reduction <maximumf>, %1, %cst [1] : vector<1x64x32xf32> to vector<1x32xf32>
    %cst_2 = arith.constant dense<0.000000e+00> : vector<1x32xf32>
    %3 = vector.multi_reduction <add>, %1, %cst_2 [1] : vector<1x64x32xf32> to vector<1x32xf32>
    %cst_3 = arith.constant 6.400000e+01 : f32
    %4 = vector.broadcast %cst_3 : f32 to vector<1x32xf32>
    %5 = arith.divf %3, %4 : vector<1x32xf32>
    %6 = tpu.concatenate %2, %5 in 0 : vector<1x32xf32>, vector<1x32xf32> -> vector<2x32xf32>
    %c0_4 = arith.constant 0 : index
    %c0_5 = arith.constant 0 : index
    %7 = vector.load %arg2[%c0_4, %c0_5] : memref<32x8xf32, #tpu.memory_space<vmem>>, vector<32x8xf32>
    %cst_6 = arith.constant dense<0.000000e+00> : vector<2x8xf32>
    %8 = tpu.matmul %6, %7, %cst_6 {dimension_numbers = #tpu.dot_dimension_numbers<[1], [0], [0], [1], [0, 0, 1, 1], [], []>} : vector<2x32xf32>, vector<32x8xf32>, vector<2x8xf32> -> vector<2x8xf32>
    %cst_7 = arith.constant 0.000000e+00 : f32
    %9 = vector.broadcast %cst_7 : f32 to vector<2x8xf32>
    %10 = arith.maximumf %8, %9 : vector<2x8xf32>
    %c0_8 = arith.constant 0 : index
    %c0_9 = arith.constant 0 : index
    %11 = vector.load %arg3[%c0_8, %c0_9] : memref<8x32xf32, #tpu.memory_space<vmem>>, vector<8x32xf32>
    %cst_10 = arith.constant dense<0.000000e+00> : vector<2x32xf32>
    %12 = tpu.matmul %10, %11, %cst_10 {dimension_numbers = #tpu.dot_dimension_numbers<[1], [0], [0], [1], [0, 0, 1, 1], [], []>} : vector<2x8xf32>, vector<8x32xf32>, vector<2x32xf32> -> vector<2x32xf32>
    %13 = vector.extract_strided_slice %12 {offsets = [0, 0], sizes = [1, 32], strides = [1, 1]} : vector<2x32xf32> to vector<1x32xf32>
    %14 = vector.extract_strided_slice %12 {offsets = [1, 0], sizes = [1, 32], strides = [1, 1]} : vector<2x32xf32> to vector<1x32xf32>
    %15 = arith.addf %13, %14 : vector<1x32xf32>
    %16 = arith.negf %15 : vector<1x32xf32>
    %17 = math.exp %16 : vector<1x32xf32>
    %cst_11 = arith.constant 1.000000e+00 : f32
    %18 = vector.broadcast %cst_11 : f32 to vector<1x32xf32>
    %19 = arith.addf %18, %17 : vector<1x32xf32>
    %20 = arith.divf %18, %19 : vector<1x32xf32>
    %21 = vector.shape_cast %20 : vector<1x32xf32> to vector<1x1x32xf32>
    %22 = vector.broadcast %21 : vector<1x1x32xf32> to vector<1x64x32xf32>
    %23 = arith.mulf %1, %22 : vector<1x64x32xf32>
    %cst_12 = arith.constant dense<0xFF800000> : vector<1x64xf32>
    %24 = vector.multi_reduction <maximumf>, %23, %cst_12 [2] : vector<1x64x32xf32> to vector<1x64xf32>
    %25 = vector.shape_cast %24 : vector<1x64xf32> to vector<1x64x1xf32>
    %cst_13 = arith.constant dense<0.000000e+00> : vector<1x64xf32>
    %26 = vector.multi_reduction <add>, %23, %cst_13 [2] : vector<1x64x32xf32> to vector<1x64xf32>
    %27 = vector.shape_cast %26 : vector<1x64xf32> to vector<1x64x1xf32>
    %cst_14 = arith.constant 3.200000e+01 : f32
    %28 = vector.broadcast %cst_14 : f32 to vector<1x64x1xf32>
    %29 = arith.divf %27, %28 : vector<1x64x1xf32>
    %c0_15 = arith.constant 0 : index
    %30 = memref.load %arg4[%c0_15] : memref<2xf32, #tpu.memory_space<smem>>
    %31 = vector.broadcast %30 : f32 to vector<1x64x1xf32>
    %32 = arith.mulf %31, %25 : vector<1x64x1xf32>
    %c1 = arith.constant 1 : index
    %33 = memref.load %arg4[%c1] : memref<2xf32, #tpu.memory_space<smem>>
    %34 = vector.broadcast %33 : f32 to vector<1x64x1xf32>
    %35 = arith.mulf %34, %29 : vector<1x64x1xf32>
    %36 = arith.addf %32, %35 : vector<1x64x1xf32>
    %c0_16 = arith.constant 0 : index
    %37 = memref.load %arg5[%c0_16] : memref<1xf32, #tpu.memory_space<smem>>
    %38 = vector.broadcast %37 : f32 to vector<1x64x1xf32>
    %39 = arith.addf %36, %38 : vector<1x64x1xf32>
    %40 = arith.negf %39 : vector<1x64x1xf32>
    %41 = math.exp %40 : vector<1x64x1xf32>
    %cst_17 = arith.constant 1.000000e+00 : f32
    %42 = vector.broadcast %cst_17 : f32 to vector<1x64x1xf32>
    %43 = arith.addf %42, %41 : vector<1x64x1xf32>
    %44 = arith.divf %42, %43 : vector<1x64x1xf32>
    %45 = vector.broadcast %44 : vector<1x64x1xf32> to vector<1x64x32xf32>
    %46 = arith.mulf %23, %45 : vector<1x64x32xf32>
    %47 = arith.addf %46, %1 : vector<1x64x32xf32>
    %48 = vector.shape_cast %47 : vector<1x64x32xf32> to vector<64x32xf32>
    %c0_18 = arith.constant 0 : index
    %c0_19 = arith.constant 0 : index
    %49 = vector.load %arg6[%c0_18, %c0_19] : memref<32x16xf32, #tpu.memory_space<vmem>>, vector<32x16xf32>
    %cst_20 = arith.constant dense<0.000000e+00> : vector<64x16xf32>
    %50 = tpu.matmul %48, %49, %cst_20 {dimension_numbers = #tpu.dot_dimension_numbers<[1], [0], [0], [1], [0, 0, 1, 1], [], []>} : vector<64x32xf32>, vector<32x16xf32>, vector<64x16xf32> -> vector<64x16xf32>
    %c0_21 = arith.constant 0 : index
    %c0_22 = arith.constant 0 : index
    %51 = vector.load %arg7[%c0_21, %c0_22] : memref<1x16xf32, #tpu.memory_space<vmem>>, vector<1x16xf32>
    %52 = vector.broadcast %51 : vector<1x16xf32> to vector<64x16xf32>
    %53 = arith.addf %50, %52 : vector<64x16xf32>
    %54 = vector.shape_cast %53 : vector<64x16xf32> to vector<1x64x16xf32>
    %c0_23 = arith.constant 0 : index
    %c0_24 = arith.constant 0 : index
    %c0_25 = arith.constant 0 : index
    %55 = vector.load %arg8[%c0_23, %c0_24, %c0_25] : memref<1x64x16xf32, #tpu.memory_space<vmem>>, vector<1x64x16xf32>
    tpu.vector_store %arg8[%c0_23, %c0_24, %c0_25], %54 {strides = array<i32>} : memref<1x64x16xf32, #tpu.memory_space<vmem>>, vector<1x64x16xf32>,
    return
  }
  func.func @transform_0(%arg0: i32) -> (i32, i32, i32) {
    %c0_i32 = arith.constant 0 : i32
    %c0_i32_0 = arith.constant 0 : i32
    %c0_i32_1 = arith.constant 0 : i32
    return %arg0, %c0_i32, %c0_i32_0 : i32, i32, i32
  }
  func.func @transform_1(%arg0: i32) -> (i32, i32) {
    %c0_i32 = arith.constant 0 : i32
    %c0_i32_0 = arith.constant 0 : i32
    %c0_i32_1 = arith.constant 0 : i32
    return %c0_i32, %c0_i32_0 : i32, i32
  }
  func.func @transform_2(%arg0: i32) -> (i32, i32) {
    %c0_i32 = arith.constant 0 : i32
    %c0_i32_0 = arith.constant 0 : i32
    %c0_i32_1 = arith.constant 0 : i32
    return %c0_i32, %c0_i32_0 : i32, i32
  }
  func.func @transform_3(%arg0: i32) -> i32 {
    %c0_i32 = arith.constant 0 : i32
    %c0_i32_0 = arith.constant 0 : i32
    return %c0_i32 : i32
  }
  func.func @transform_4(%arg0: i32) -> i32 {
    %c0_i32 = arith.constant 0 : i32
    %c0_i32_0 = arith.constant 0 : i32
    return %c0_i32 : i32
  }
  func.func @transform_5(%arg0: i32) -> (i32, i32) {
    %c0_i32 = arith.constant 0 : i32
    %c0_i32_0 = arith.constant 0 : i32
    %c0_i32_1 = arith.constant 0 : i32
    return %c0_i32, %c0_i32_0 : i32, i32
  }
  func.func @transform_6(%arg0: i32) -> (i32, i32) {
    %c0_i32 = arith.constant 0 : i32
    %c0_i32_0 = arith.constant 0 : i32
    %c0_i32_1 = arith.constant 0 : i32
    return %c0_i32, %c0_i32_0 : i32, i32
  }
  func.func @transform_7(%arg0: i32) -> (i32, i32, i32) {
    %c0_i32 = arith.constant 0 : i32
    %c0_i32_0 = arith.constant 0 : i32
    %c0_i32_1 = arith.constant 0 : i32
    return %arg0, %c0_i32, %c0_i32_0 : i32, i32, i32
  }
}

</mosaic_0001>

<bundles_post_ra>
// kernel: tpu_custom_call.1
= control target key start
LH: loop header
LB: loop body
LE: loop exit
PB: predicated region body
PF: predicated region fallthrough
CT: control target
= control target key end

     0   :  { %s1395_s0 = inlined_call_operand.vmem [shape: bf16[2,64,32], index: 0, kind: input, shape index: {}]   ;;  %s1396_s1 = inlined_call_operand.vmem [shape: f32[32,8], index: 1, kind: input, shape index: {}]   ;;  %s1397_s2 = inlined_call_operand.vmem [shape: f32[8,32], index: 2, kind: input, shape index: {}]   ;;  %s1398_s3 = inlined_call_operand.vmem [shape: f32[2], index: 3, kind: input, shape index: {}]   ;;  %s1399_s4 = inlined_call_operand.<no memory space> [shape: f32[1], index: 4, kind: input, shape index: {}]   ;;  %s1400_s5 = inlined_call_operand.vmem [shape: f32[32,16], index: 5, kind: input, shape index: {}]   ;;  %s1401_s6 = inlined_call_operand.vmem [shape: f32[1,16], index: 6, kind: input, shape index: {}]   ;;  %s1402_s7 = inlined_call_operand.vmem [shape: f32[2,64,16], index: 7, kind: output, shape index: {}]  }
   0x1   :  { %12 = sst [smem:[#allocation2]] %s1399_s4 }
   0x2   :  { %13 = vsyncpa [#allocation4], 0  ;;  %s1155_s26 = smov 0  }
   0x3 LB: > { %s1161_s27 = sadd.s32 4294967295, %s1107_s26   ;;  %p909_p0 = scmp.ge.s32.totalorder %s1107_s26, 1  ;;  %s1107_s26 = sphi %s1155_s26, %s19_s26  }
   0x4   : > { %p202_p1 = scmp.lt.s32.totalorder %s1107_s26, 3  ;;  %s221_s4 = sshll.u32 %s1398_s3, 4  ;;  %s222_s4 = int_to_ptr.vmem [resolvable:$true] %s221_s4 }
   0x5   : > { %p1033_p3 = scmp.eq.s32.totalorder %s1161_s27, 0  ;;  %s1082_s8 = scalar_lea.vmem %s222_s4, 16 }
   0x6   : > { %p1168_p2 = pnand %p909_p0, %p202_p1  ;;  %p1083_p6 = scmp.ne.s32.totalorder %s222_s4, %s1082_s8 }
   0x7   : > { %p1090_p10 = scmp.lt.s32.totalorder %s222_s4, %s222_s4  ;;  %p1091_p11 = scmp.lt.s32.totalorder %s1082_s8, %s1082_s8 }
   0x8   : > { %p1029_p4 = pneg %p1168_p2 }
   0x9   : > { %p1092_p12 = por %p1091_p11, %p1090_p10 }
   0xa   : > { %p1030_p5 = pnand %p1033_p3, %p1029_p4 }
   0xc   : > { %p1084_p7 = pneg %p1030_p5 }
   0xe   : > { %p1085_p8 = pnand %p1084_p7, %p1083_p6 }
  0x10   : > { %p1086_p9 = pneg %p1085_p8 }
  0x12   : > { %p1093_p13 = pnand %p1092_p12, %p1086_p9 }
  0x14   : > { %1096 = shalt.err (!%p1093_p13)
}
  0x15   : > { %s1109_s9 = smov [#allocation3]   ;;  %251 = sbr.rel (%p1168_p2) target bundleno = 908 (0x38c), region = 48 }
  0x16   : > { %1032 = dma.vmem_to_smem (!%p1030_p5), %s222_s4, 16, %s1109_s9, [#allocation4]  }
  0x1a   : > { %1102 = dma.done.wait (%p1033_p3), [#allocation4], 16  }
  0x1b   : > { %1104 = vsyncadd (%p1033_p3), [#allocation4], 4294967280 }
  0x1c   : > { %257 = sfence }
  0x1d   : > { %v360_v0 = vld [vmem:[%s1396_s1 + $0x18] sm:$0xff]  ;;  %p284_p0 = scmp.lt.s32.totalorder %s1161_s27, 1  ;;  %v1110_v1 = vmov 0.0   ;;  %v359_v2 = vld [vmem:[%s1396_s1 + $0x10] sm:$0xff]  ;;  %vm1111_vm0 = vmmov 0   ;;  %v358_v3 = vld [vmem:[%s1396_s1 + $0x8] sm:$0xff] }
  0x1e   : > { %981 = vmatprep.subr.mxu0 %v1110_v1  ;;  %989 = vmatprep.mubr.msk.f32.mxu0 %vm1111_vm0, %v1110_v1  ;;  %v357_v4 = vld [vmem:[%s1396_s1] sm:$0xff]  ;;  %vm310_vm1 = vcmask 261120   ;;  %vm355_vm2 = vcmask 1040384   ;;  %vm436_vm3 = vcmask 64512   ;;  %s921_s10 = sld [smem:[#allocation3 + $0x1]]  ;;  %vm831_vm4 = vcmask 130048  }
  0x1f   : > { %982 = vmatpush3.msra.mxu0 %v360_v0  ;;  %s1405_s27 = smov (!%p284_p0, %s1161_s27), 1  ;;  %992 = vmatprep.subr.mxu1 %v1110_v1  ;;  %v435_v61 = vld [vmem:[%s1397_s2] sm:$0xff]  ;;  %s589_s11 = sld [smem:[#allocation3]] }
  0x20   : > { %983 = vmatprep.subr.mxu0 %v1110_v1  ;;  %994 = vmatprep.mubr.msk.f32.mxu1 %vm1111_vm0, %v1110_v1  ;;  %s941_s16 = sshll.u32 %s1405_s27, 5  ;;  %s617_s12 = sld [smem:[#allocation2]] }
  0x21   : > { %984 = vmatpush3.msra.mxu0 %v359_v2  ;;  %s288_s21 = scalar_lea.vmem %s1395_s0, %s941_s16  ;;  %993 = vmatpush3.msra.mxu1 %v435_v61  ;;  %s942_s13 = sshll.u32 %s1405_s27, 6 }
  0x22   : > { %985 = vmatprep.subr.mxu0 %v1110_v1  ;;  %v944_v5 = vld [vmem:[%s288_s21] sm:$0xff]   ;;  %v959_v6 = vld [vmem:[%s288_s21 + $0x8] sm:$0xff]   ;;  %v960_v7 = vld [vmem:[%s288_s21 + $0x10] sm:$0xff]   ;;  %s293_s18 = scalar_lea.vmem %s1402_s7, %s942_s13 }
  0x23   : > { %986 = vmatpush3.msra.mxu0 %v358_v3  ;;  %v1203_v8 = vunpack.c.l.bf16 %v944_v5  ;;  %v1205_v9 = vunpack.c.h.bf16 %v944_v5  ;;  %v1207_v10 = vunpack.c.l.bf16 %v959_v6  ;;  %v1209_v11 = vunpack.c.h.bf16 %v959_v6  ;;  %v961_v12 = vld [vmem:[%s288_s21 + $0x18] sm:$0xff]  }
  0x24   : > { %987 = vmatprep.subr.mxu0 %v1110_v1  ;;  %v1211_v13 = vunpack.c.l.bf16 %v960_v7  ;;  %v1213_v14 = vunpack.c.h.bf16 %v960_v7  ;;  %v1215_v15 = vunpack.c.l.bf16 %v961_v12  ;;  %v1217_v16 = vunpack.c.h.bf16 %v961_v12 }
  0x25   : > { %988 = vmatpush3.msra.mxu0 %v357_v4  ;;  %v311_v17 = vsel %vm310_vm1, %v1203_v8, -inf  ;;  %v312_v18 = vsel %vm310_vm1, %v1205_v9, -inf  ;;  %v313_v19 = vsel %vm310_vm1, %v1207_v10, -inf  ;;  %v314_v20 = vsel %vm310_vm1, %v1209_v11, -inf }
  0x26   : > { %v315_v21 = vsel %vm310_vm1, %v1211_v13, -inf  ;;  %v317_v22 = vsel %vm310_vm1, %v1213_v14, -inf  ;;  %v319_v23 = vsel %vm310_vm1, %v1215_v15, -inf  ;;  %v321_v24 = vsel %vm310_vm1, %v1217_v16, -inf }
  0x27   : > { %v316_v25 = vmax.f32 %v311_v17, %v315_v21  ;;  %v318_v26 = vmax.f32 %v312_v18, %v317_v22  ;;  %v320_v27 = vmax.f32 %v313_v19, %v319_v23  ;;  %v322_v28 = vmax.f32 %v314_v20, %v321_v24 }
  0x28   : > { %v332_v29 = vsel %vm310_vm1, %v1203_v8, 0.0  ;;  %v333_v30 = vsel %vm310_vm1, %v1205_v9, 0.0  ;;  %v335_v31 = vsel %vm310_vm1, %v1207_v10, 0.0  ;;  %v337_v35 = vsel %vm310_vm1, %v1209_v11, 0.0 }
  0x29   : > { %v323_v32 = vmax.f32 %v316_v25, %v318_v26  ;;  %v324_v33 = vmax.f32 %v320_v27, %v322_v28  ;;  %v334_v34 = vadd.f32 %v333_v30, %v332_v29  ;;  %v339_v38 = vsel %vm310_vm1, %v1211_v13, 0.0 }
  0x2a   : > { %v341_v41 = vsel %vm310_vm1, %v1213_v14, 0.0  ;;  %v343_v43 = vsel %vm310_vm1, %v1215_v15, 0.0  ;;  %v345_v46 = vsel %vm310_vm1, %v1217_v16, 0.0  ;;  %v520_v12 = vlaneseq }
  0x2b   : > { %v325_v36 = vmax.f32 %v323_v32, %v324_v33  ;;  %v336_v37 = vadd.f32 %v335_v31, %v334_v34 }
  0x2c   : > { %v521_v17 = vshrl.u32 %v520_v12, 7 }
  0x2d   : > { %v326_v39 = vrot.slane %v325_v36, 4  ;;  %v338_v40 = vadd.f32 %v337_v35, %v336_v37 }
  0x2e   : > { %v522_v18 = vsub.s32 0, %v521_v17 }
  0x2f   : > { %v340_v42 = vadd.f32 %v339_v38, %v338_v40  ;;  %v327_v44 = vmax.f32 %v325_v36, %v326_v39 }
  0x31   : > { %v342_v45 = vadd.f32 %v341_v41, %v340_v42  ;;  %v328_v48 = vrot.slane %v327_v44, 2 }
  0x33   : > { %v344_v47 = vadd.f32 %v343_v43, %v342_v45  ;;  %v329_v51 = vmax.f32 %v327_v44, %v328_v48  ;;  %v694_v45 = vld [vmem:[%s1400_s5 + $0x18] sm:$0xff]  ;;  %v691_v48 = vld [vmem:[%s1400_s5] sm:$0xff] }
  0x34   : > { %1017 = vmatprep.subr.mxu1 %v694_v45  ;;  %997 = vmatprep.subr.mxu0 %v694_v45 }
  0x35   : > { %v346_v49 = vadd.f32 %v345_v46, %v344_v47  ;;  %v330_v54 = vrot.slane %v329_v51, 1  ;;  %v693_v46 = vld [vmem:[%s1400_s5 + $0x10] sm:$0xff]  ;;  %v692_v47 = vld [vmem:[%s1400_s5 + $0x8] sm:$0xff] }
  0x37   : > { %v347_v50 = vrot.slane %v346_v49, 4  ;;  %v331_v57 = vmax.f32 %v329_v51, %v330_v54  ;;  %v1325_v51 = vstv %s589_s11 }
  0x39   : > { %v348_v52 = vadd.f32 %v347_v50, %v346_v49  ;;  %v1323_v49 = vstv %s921_s10 }
  0x3b   : > { %v349_v53 = vrot.slane %v348_v52, 2 }
  0x3d   : > { %v350_v55 = vadd.f32 %v349_v53, %v348_v52 }
  0x3f   : > { %v351_v56 = vrot.slane %v350_v55, 1 }
  0x41   : > { %v352_v58 = vadd.f32 %v351_v56, %v350_v55  ;;  %v1329_v56 = vstv %s617_s12 }
  0x43   : > { %v354_v59 = vmul.f32 0.015625, %v352_v58 }
  0x45   : > { %v356_v60 = vsel %vm355_vm2, %v331_v57, %v354_v59 }
  0x46   : > { %990 = vmatmul.mubr.msk.f32.vlgmr.msra.gmra.mxu0 %vm310_vm1, %v356_v60 }
  0x47   : > { %998 = vmatpush3.msra.mxu0 %v694_v45 }
  0x48   : > { %999 = vmatprep.subr.mxu0 %v693_v46 }
  0x49   : > { %1000 = vmatpush3.msra.mxu0 %v693_v46 }
  0x4a   : > { %1001 = vmatprep.subr.mxu0 %v692_v47 }
  0x4b   : > { %1002 = vmatpush3.msra.mxu0 %v692_v47 }
  0x4c   : > { %1003 = vmatprep.subr.mxu0 %v691_v48 }
  0x4d   : > { %1004 = vmatpush3.msra.mxu0 %v691_v48 }
 0x106   : > { %v430_v62 = vpop.f32.mrf.mxu0 }
 0x107   : > { %v434_v63 = vmax.f32 %v430_v62, 0.0 }
 0x108   : > { %v991_v0 = vpop.f32.mrf.mxu0 }
 0x109   : > { %995 = vmatmul.mubr.msk.f32.vlgmr.msra.gmra.mxu1 %vm436_vm3, %v434_v63 }
 0x10a   : > { %1021 = vmatpush3.msra.mxu1 %v694_v45 }
 0x10b   : > { %1018 = vmatprep.subr.mxu1 %v693_v46 }
 0x10c   : > { %1022 = vmatpush3.msra.mxu1 %v693_v46 }
 0x10d   : > { %1019 = vmatprep.subr.mxu1 %v692_v47 }
 0x10e   : > { %1023 = vmatpush3.msra.mxu1 %v692_v47 }
 0x10f   : > { %1020 = vmatprep.subr.mxu1 %v691_v48 }
 0x110   : > { %1024 = vmatpush3.msra.mxu1 %v691_v48 }
 0x1c9   : > { %v506_v1 = vpop.f32.mrf.mxu1 }
 0x1ca   : > { %v511_v2 = vrot.slane %v506_v1, 1 }
 0x1cb   : > { %v996_v3 = vpop.f32.mrf.mxu1 }
 0x1cc   : > { %v513_v4 = vadd.f32 %v511_v2, %v506_v1 }
 0x1ce   : > { %v920_v5 = vmul.f32 -1.442695, %v513_v4 }
 0x1d0   : > { %1046 = vpow2.f32 %v920_v5 }
 0x1dd   : > { %v1047_v6 = vpop.eup %1046 }
 0x1de   : > { %v517_v7 = vadd.f32 1.0, %v1047_v6 }
 0x1e0   : > { %1048 = vrcp.f32 %v517_v7 }
 0x1ed   : > { %v1049_v19 = vpop.eup %1048 }
 0x1ee   : > { %v523_v20 = vrot.slane %v1049_v19, %v522_v18 }
 0x1f0   : > { %v1256_v21 = vmul.f32 %v1207_v10, %v523_v20  ;;  %v1263_v24 = vmul.f32 %v1209_v11, %v523_v20  ;;  %v1270_v27 = vmul.f32 %v1211_v13, %v523_v20  ;;  %v1273_v28 = vmul.f32 %v1213_v14, %v523_v20 }
 0x1f1   : > { %v1284_v33 = vmul.f32 %v1215_v15, %v523_v20  ;;  %v1287_v34 = vmul.f32 %v1203_v8, %v523_v20  ;;  %v1294_v37 = vmul.f32 %v1217_v16, %v523_v20  ;;  %v1297_v38 = vmul.f32 %v1205_v9, %v523_v20 }
 0x1f2   : > { %v562_v22 = vsel %vm310_vm1, %v1256_v21, 0.0  ;;  %v538_v23 = vsel %vm310_vm1, %v1256_v21, -inf  ;;  %v565_v25 = vsel %vm310_vm1, %v1263_v24, 0.0  ;;  %v541_v26 = vsel %vm310_vm1, %v1263_v24, -inf }
 0x1f3   : > { %563 = vadd.xlane.f32.xlu0 %v562_v22  ;;  %539 = vmax.xlane.f32.xlu1 %v538_v23  ;;  %v568_v29 = vsel %vm310_vm1, %v1270_v27, 0.0  ;;  %v571_v30 = vsel %vm310_vm1, %v1273_v28, 0.0  ;;  %v544_v31 = vsel %vm310_vm1, %v1270_v27, -inf  ;;  %v547_v32 = vsel %vm310_vm1, %v1273_v28, -inf }
 0x1f4   : > { %v574_v35 = vsel %vm310_vm1, %v1284_v33, 0.0  ;;  %v556_v36 = vsel %vm310_vm1, %v1287_v34, 0.0  ;;  %v577_v39 = vsel %vm310_vm1, %v1294_v37, 0.0  ;;  %v559_v40 = vsel %vm310_vm1, %v1297_v38, 0.0 }
 0x1f5   : > { %v550_v41 = vsel %vm310_vm1, %v1284_v33, -inf  ;;  %v532_v42 = vsel %vm310_vm1, %v1287_v34, -inf  ;;  %v553_v43 = vsel %vm310_vm1, %v1294_v37, -inf  ;;  %v535_v44 = vsel %vm310_vm1, %v1297_v38, -inf }
 0x1f7   : > { %566 = vadd.xlane.f32.xlu0 %v565_v25  ;;  %542 = vmax.xlane.f32.xlu1 %v541_v26 }
 0x1fb   : > { %569 = vadd.xlane.f32.xlu0 %v568_v29  ;;  %572 = vadd.xlane.f32.xlu1 %v571_v30 }
 0x1ff   : > { %545 = vmax.xlane.f32.xlu0 %v544_v31  ;;  %548 = vmax.xlane.f32.xlu1 %v547_v32 }
 0x203   : > { %575 = vadd.xlane.f32.xlu1 %v574_v35  ;;  %557 = vadd.xlane.f32.xlu0 %v556_v36 }
 0x207   : > { %578 = vadd.xlane.f32.xlu1 %v577_v39  ;;  %560 = vadd.xlane.f32.xlu0 %v559_v40 }
 0x20b   : > { %551 = vmax.xlane.f32.xlu1 %v550_v41  ;;  %533 = vmax.xlane.f32.xlu0 %v532_v42 }
 0x20f   : > { %554 = vmax.xlane.f32.xlu1 %v553_v43  ;;  %536 = vmax.xlane.f32.xlu0 %v535_v44 }
 0x27c   : > { %v564_v50 = vpop.xlane.xlu0 %563  ;;  %v540_v52 = vpop.xlane.xlu1 %539 }
 0x27d   : > { %v583_v53 = vmul.f32 0.03125, %v564_v50  ;;  %v593_v55 = vmul.f32 %v1325_v51, %v540_v52 }
 0x27f   : > { %v603_v54 = vmul.f32 %v1323_v49, %v583_v53 }
 0x280   : > { %v567_v57 = vpop.xlane.xlu0 %566  ;;  %v543_v58 = vpop.xlane.xlu1 %542 }
 0x281   : > { %v611_v59 = vadd.f32 %v603_v54, %v593_v55  ;;  %v584_v60 = vmul.f32 0.03125, %v567_v57  ;;  %v594_v63 = vmul.f32 %v1325_v51, %v543_v58 }
 0x283   : > { %v621_v61 = vadd.f32 %v1329_v56, %v611_v59  ;;  %v604_v62 = vmul.f32 %v1323_v49, %v584_v60 }
 0x284   : > { %v570_v0 = vpop.xlane.xlu0 %569  ;;  %v573_v1 = vpop.xlane.xlu1 %572 }
 0x285   : > { %v924_v2 = vmul.f32 -1.442695, %v621_v61  ;;  %v612_v3 = vadd.f32 %v604_v62, %v594_v63  ;;  %v585_v4 = vmul.f32 0.03125, %v570_v0  ;;  %v586_v5 = vmul.f32 0.03125, %v573_v1 }
 0x287   : > { %1050 = vpow2.f32 %v924_v2  ;;  %v622_v6 = vadd.f32 %v1329_v56, %v612_v3  ;;  %v605_v7 = vmul.f32 %v1323_v49, %v585_v4  ;;  %v606_v19 = vmul.f32 %v1323_v49, %v586_v5 }
 0x288   : > { %v546_v12 = vpop.xlane.xlu0 %545  ;;  %v549_v17 = vpop.xlane.xlu1 %548 }
 0x289   : > { %v925_v18 = vmul.f32 -1.442695, %v622_v6  ;;  %v595_v20 = vmul.f32 %v1325_v51, %v546_v12  ;;  %v596_v22 = vmul.f32 %v1325_v51, %v549_v17 }
 0x28b   : > { %1052 = vpow2.f32 %v925_v18  ;;  %v613_v23 = vadd.f32 %v605_v7, %v595_v20  ;;  %v614_v25 = vadd.f32 %v606_v19, %v596_v22 }
 0x28c   : > { %v576_v26 = vpop.xlane.xlu1 %575  ;;  %v558_v29 = vpop.xlane.xlu0 %557 }
 0x28d   : > { %v623_v30 = vadd.f32 %v1329_v56, %v613_v23  ;;  %v624_v31 = vadd.f32 %v1329_v56, %v614_v25  ;;  %v587_v36 = vmul.f32 0.03125, %v576_v26  ;;  %v581_v41 = vmul.f32 0.03125, %v558_v29 }
 0x28f   : > { %v926_v32 = vmul.f32 -1.442695, %v623_v30  ;;  %v927_v35 = vmul.f32 -1.442695, %v624_v31  ;;  %v607_v43 = vmul.f32 %v1323_v49, %v587_v36  ;;  %v601_v48 = vmul.f32 %v1323_v49, %v581_v41 }
 0x290   : > { %v579_v39 = vpop.xlane.xlu1 %578  ;;  %v561_v40 = vpop.xlane.xlu0 %560 }
 0x291   : > { %1054 = vpow2.f32 %v926_v32  ;;  %v588_v44 = vmul.f32 0.03125, %v579_v39  ;;  %v582_v53 = vmul.f32 0.03125, %v561_v40 }
 0x292   : > { %1056 = vpow2.f32 %v927_v35 }
 0x293   : > { %v608_v58 = vmul.f32 %v1323_v49, %v588_v44  ;;  %v602_v1 = vmul.f32 %v1323_v49, %v582_v53 }
 0x294   : > { %v1051_v42 = vpop.eup %1050  ;;  %v552_v45 = vpop.xlane.xlu1 %551 }
 0x295   : > { %v534_v46 = vpop.xlane.xlu0 %533  ;;  %v653_v47 = vadd.f32 1.0, %v1051_v42  ;;  %v597_v50 = vmul.f32 %v1325_v51, %v552_v45 }
 0x296   : > { %v591_v52 = vmul.f32 %v1325_v51, %v534_v46 }
 0x297   : > { %1058 = vrcp.f32 %v653_v47  ;;  %v615_v54 = vadd.f32 %v607_v43, %v597_v50 }
 0x298   : > { %v609_v55 = vadd.f32 %v601_v48, %v591_v52  ;;  %v1053_v57 = vpop.eup %1052  ;;  %v555_v59 = vpop.xlane.xlu1 %554 }
 0x299   : > { %v537_v60 = vpop.xlane.xlu0 %536  ;;  %v654_v61 = vadd.f32 1.0, %v1053_v57  ;;  %v625_v62 = vadd.f32 %v1329_v56, %v615_v54  ;;  %v598_v0 = vmul.f32 %v1325_v51, %v555_v59 }
 0x29a   : > { %v619_v63 = vadd.f32 %v1329_v56, %v609_v55  ;;  %v592_v2 = vmul.f32 %v1325_v51, %v537_v60 }
 0x29b   : > { %1060 = vrcp.f32 %v654_v61  ;;  %v928_v3 = vmul.f32 -1.442695, %v625_v62  ;;  %v616_v5 = vadd.f32 %v608_v58, %v598_v0 }
 0x29c   : > { %v922_v4 = vmul.f32 -1.442695, %v619_v63  ;;  %v610_v6 = vadd.f32 %v602_v1, %v592_v2 }
 0x29d   : > { %1062 = vpow2.f32 %v928_v3  ;;  %v626_v7 = vadd.f32 %v1329_v56, %v616_v5 }
 0x29e   : > { %v1055_v12 = vpop.eup %1054  ;;  %1064 = vpow2.f32 %v922_v4  ;;  %v620_v17 = vadd.f32 %v1329_v56, %v610_v6 }
 0x29f   : > { %v1057_v18 = vpop.eup %1056  ;;  %v655_v19 = vadd.f32 1.0, %v1055_v12  ;;  %v929_v20 = vmul.f32 -1.442695, %v626_v7 }
 0x2a0   : > { %v656_v22 = vadd.f32 1.0, %v1057_v18  ;;  %v923_v23 = vmul.f32 -1.442695, %v620_v17 }
 0x2a1   : > { %1066 = vrcp.f32 %v655_v19 }
 0x2a2   : > { %1068 = vrcp.f32 %v656_v22 }
 0x2a3   : > { %1070 = vpow2.f32 %v929_v20 }
 0x2a4   : > { %v1059_v49 = vpop.eup %1058  ;;  %1072 = vpow2.f32 %v923_v23 }
 0x2a5   : > { %v677_v51 = vmul.f32 %v1059_v49, %v1256_v21 }
 0x2a7   : > { %v685_v25 = vadd.f32 %v1207_v10, %v677_v51 }
 0x2a8   : > { %v1061_v26 = vpop.eup %1060 }
 0x2a9   : > { %1008 = vmatprep.mubr.msk.f32.mxu1 %vm310_vm1, %v685_v25  ;;  %v678_v29 = vmul.f32 %v1061_v26, %v1263_v24 }
 0x2aa   : > { %v1063_v56 = vpop.eup %1062 }
 0x2ab   : > { %v1065_v30 = vpop.eup %1064  ;;  %v657_v31 = vadd.f32 1.0, %v1063_v56  ;;  %v686_v32 = vadd.f32 %v1209_v11, %v678_v29 }
 0x2ac   : > { %v651_v35 = vadd.f32 1.0, %v1065_v30 }
 0x2ad   : > { %1074 = vrcp.f32 %v657_v31  ;;  %1009 = vmatmul.mubr.msk.f32.vlgmr.msra.gmra.mxu1 %vm310_vm1, %v686_v32 }
 0x2ae   : > { %v1067_v36 = vpop.eup %1066  ;;  %1076 = vrcp.f32 %v651_v35 }
 0x2af   : > { %v1069_v39 = vpop.eup %1068  ;;  %v679_v21 = vmul.f32 %v1067_v36, %v1270_v27 }
 0x2b0   : > { %v1071_v10 = vpop.eup %1070  ;;  %v680_v40 = vmul.f32 %v1069_v39, %v1273_v28 }
 0x2b1   : > { %v1073_v41 = vpop.eup %1072  ;;  %v658_v42 = vadd.f32 1.0, %v1071_v10  ;;  %v687_v24 = vadd.f32 %v1211_v13, %v679_v21 }
 0x2b2   : > { %v652_v43 = vadd.f32 1.0, %v1073_v41  ;;  %v688_v44 = vadd.f32 %v1213_v14, %v680_v40 }
 0x2b3   : > { %1078 = vrcp.f32 %v658_v42  ;;  %1011 = vmatprep.mubr.msk.f32.mxu1 %vm310_vm1, %v687_v24 }
 0x2b4   : > { %1080 = vrcp.f32 %v652_v43  ;;  %1012 = vmatmul.mubr.msk.f32.gmra.mxu1 %vm310_vm1, %v688_v44 }
 0x2ba   : > { %v1075_v11 = vpop.eup %1074 }
 0x2bb   : > { %v1077_v45 = vpop.eup %1076  ;;  %v681_v27 = vmul.f32 %v1075_v11, %v1284_v33 }
 0x2bc   : > { %v675_v28 = vmul.f32 %v1077_v45, %v1287_v34 }
 0x2bd   : > { %v689_v46 = vadd.f32 %v1215_v15, %v681_v27 }
 0x2be   : > { %v683_v13 = vadd.f32 %v1203_v8, %v675_v28  ;;  %v930_v8 = vld [vmem:[%s1401_s6] ss:$0 sm:$0xff] }
 0x2bf   : > { %1014 = vmatprep.mubr.msk.f32.mxu1 %vm310_vm1, %v689_v46 }
 0x2c0   : > { %v1079_v14 = vpop.eup %1078  ;;  %1005 = vmatprep.mubr.msk.f32.mxu0 %vm310_vm1, %v683_v13 }
 0x2c1   : > { %v1081_v47 = vpop.eup %1080  ;;  %v682_v48 = vmul.f32 %v1079_v14, %v1294_v37 }
 0x2c2   : > { %v676_v50 = vmul.f32 %v1081_v47, %v1297_v38 }
 0x2c3   : > { %v690_v52 = vadd.f32 %v1217_v16, %v682_v48 }
 0x2c4   : > { %v684_v33 = vadd.f32 %v1205_v9, %v676_v50 }
 0x2c5   : > { %1015 = vmatmul.mubr.msk.f32.gmra.mxu1 %vm310_vm1, %v690_v52 }
 0x2c6   : > { %1006 = vmatmul.mubr.msk.f32.vlgmr.msra.gmra.mxu0 %vm310_vm1, %v684_v33 }
 0x36d   : > { %v1010_v15 = vpop.f32.mrf.mxu1 }
 0x36e   : > { %v808_v34 = vadd.f32 %v1010_v15, %v930_v8 }
 0x36f   : > { %v802_v37 = vpop.f32.mrf.mxu1 }
 0x370   : > { %835 = vst.msk [vmem:[%s293_s18 + $0x18] sm:$0xff] %vm831_vm4, %v808_v34  ;;  %v803_v9 = vadd.f32 %v930_v8, %v802_v37 }
 0x372   : > { %834 = vst.msk [vmem:[%s293_s18 + $0x10] sm:$0xff] %vm831_vm4, %v803_v9 }
 0x374   : > { %v1013_v16 = vpop.f32.mrf.mxu1 }
 0x375   : > { %v818_v38 = vadd.f32 %v1013_v16, %v930_v8 }
 0x376   : > { %v812_v53 = vpop.f32.mrf.mxu1 }
 0x377   : > { %837 = vst.msk [vmem:[%s293_s18 + $0x28] sm:$0xff] %vm831_vm4, %v818_v38  ;;  %v813_v54 = vadd.f32 %v930_v8, %v812_v53 }
 0x379   : > { %836 = vst.msk [vmem:[%s293_s18 + $0x20] sm:$0xff] %vm831_vm4, %v813_v54 }
 0x385   : > { %v1016_v55 = vpop.f32.mrf.mxu1 }
 0x386   : > { %v1007_v57 = vpop.f32.mrf.mxu0  ;;  %v828_v58 = vadd.f32 %v1016_v55, %v930_v8 }
 0x387   : > { %v798_v59 = vadd.f32 %v1007_v57, %v930_v8  ;;  %v822_v60 = vpop.f32.mrf.mxu1 }
 0x388   : > { %839 = vst.msk [vmem:[%s293_s18 + $0x38] sm:$0xff] %vm831_vm4, %v828_v58  ;;  %v792_v61 = vpop.f32.mrf.mxu0  ;;  %v823_v62 = vadd.f32 %v930_v8, %v822_v60 }
 0x389   : > { %833 = vst.msk [vmem:[%s293_s18 + $0x8] sm:$0xff] %vm831_vm4, %v798_v59  ;;  %v793_v63 = vadd.f32 %v930_v8, %v792_v61 }
 0x38a   : > { %838 = vst.msk [vmem:[%s293_s18 + $0x30] sm:$0xff] %vm831_vm4, %v823_v62 }
 0x38b   : > { %832 = vst.msk [vmem:[%s293_s18] sm:$0xff] %vm831_vm4, %v793_v63 }
 0x38c PF: > { %s19_s26 = sadd.s32 1, %s1107_s26  }
 0x38d   : > { %p16_p1 = scmp.ge.s32.totalorder %s19_s26, 4  }
 0x38f   :  { %18 = sbr.rel (!%p16_p1) target bundleno = 3 (0x3), region = 83 }
 0x394   :  { %861 = vsyncpa [#allocation4], 1 }
 0x395   :  { %863 = vsyncpa [#allocation4 + $0x1], 1 }

</bundles_post_ra>
